<compile_context>
chip_gen: v7x
topology: tpu7x:2x2x1
jax: 0.10.0
libtpu: 0.0.40
codegen_flags: <defaults>
</compile_context>

<pallas_src>
from functools import partial

import jax
import jax.numpy as jnp
from jax.experimental import pallas as pl
from jax.experimental.pallas import tpu as pltpu


def rnn2_kernel(x_ref, h_ref,
                w1x_ref, b1_ref,
                w1hh_ref, w1hu_ref,
                wuhu_ref, wuhh_ref, buh_ref,
                wuou_ref, wuoh_ref, buo_ref,
                out_ref,
                xwh_ref, xwu_ref):
    TB, _ = x_ref.shape
    B = h_ref.shape[1]
    H = h_ref.shape[2]
    T = TB // B

    # --- Precompute the input projection for ALL timesteps in one MXU pass ---
    # cat(x, h0) @ [W_i2h | W_i2u]^T == x @ W1x + h0 @ W1h ; the x-part (and the
    # biases) do not depend on the recurrence, so do them once here.
    xw = (jnp.dot(x_ref[...], w1x_ref[...], preferred_element_type=jnp.float32)
          + b1_ref[...])                                   # (T*B, 2H)
    # Split the fused heads ONCE (lane realignment happens here, not per step).
    xwh_ref[...] = xw[:, :H]                               # i2h x-contribution
    xwu_ref[...] = xw[:, H:]                               # i2u x-contribution

    # Hoist resident recurrent weights / biases out of the time loop.
    w1hh = w1hh_ref[...]    # (H, H)  i2h, h0 part
    w1hu = w1hu_ref[...]    # (H, H)  i2u, h0 part
    wuhu = wuhu_ref[...]    # (H, H)  u2h, u part
    wuhh = wuhh_ref[...]    # (H, H)  u2h, h1 part
    buh = buh_ref[...]      # (1, H)

    h0_init = h_ref[0]      # (B, H) -- read once, not per step
    h1_init = h_ref[1]      # (B, H)
    zeros_bh = jnp.zeros((B, H), jnp.float32)

    def step(t, carry):
        h0, h1, _, _ = carry
        row = pl.multiple_of(t * B, 8)                     # sublane-aligned slice
        xh = xwh_ref[pl.ds(row, B), :]                     # (B, H)
        xu = xwu_ref[pl.ds(row, B), :]                     # (B, H)
        # i2h / i2u: only the h0-dependent matmuls sit on the recurrent chain.
        h0_new = xh + jnp.dot(h0, w1hh, preferred_element_type=jnp.float32)
        u = jnp.maximum(
            xu + jnp.dot(h0, w1hu, preferred_element_type=jnp.float32), 0.0)
        # u2h (u2o deferred to after the loop).
        h1_new = (jnp.dot(u, wuhu, preferred_element_type=jnp.float32)
                  + jnp.dot(h1, wuhh, preferred_element_type=jnp.float32)
                  + buh)
        # Carry u and the pre-update h1 so the output head runs once afterwards.
        return h0_new, h1_new, u, h1

    _, _, u_last, h1_last_in = jax.lax.fori_loop(
        0, T, step, (h0_init, h1_init, zeros_bh, zeros_bh), unroll=True)

    # Output head of the last step only: cat(u, h1) @ Wu2o^T + b, lane-padded.
    logits = (jnp.dot(u_last, wuou_ref[...], preferred_element_type=jnp.float32)
              + jnp.dot(h1_last_in, wuoh_ref[...], preferred_element_type=jnp.float32)
              + buo_ref[...])                              # (B, OP)

    # LogSoftmax over dim=1. Padded columns carry a -1e9 bias, so exp()
    # underflows to exactly 0 and they do not perturb max / sum.
    m = jnp.max(logits, axis=1, keepdims=True)
    z = logits - m
    lse = jnp.log(jnp.sum(jnp.exp(z), axis=1, keepdims=True))
    out_ref[...] = (z - lse).astype(out_ref.dtype)


def pack_params(params, input_size, hidden_size, output_size):
    """One-time weight repacking (cache this; do NOT redo it per forward)."""
    I, H, O = input_size, hidden_size, output_size
    w_i2h, b_i2h = params["i2h"]   # (H, I+H), (H,)
    w_i2u, b_i2u = params["i2u"]   # (H, I+H), (H,)
    w_u2h, b_u2h = params["u2h"]   # (H, 2H), (H,)
    w_u2o, b_u2o = params["u2o"]   # (O, 2H), (O,)

    OP = max(128, pl.cdiv(O, 128) * 128)   # lane-dense padded output width
    pad = OP - O

    packed = {
        # Layer 1: fused i2h/i2u heads, x-part (precomputed outside the loop).
        "w1x": jnp.concatenate([w_i2h[:, :I].T, w_i2u[:, :I].T], axis=1),  # (I, 2H)
        "b1": jnp.concatenate([b_i2h, b_i2u]).reshape(1, 2 * H),           # (1, 2H)
        # Layer 1: recurrent (h0) parts, kept un-fused to avoid per-step lane slices.
        "w1hh": w_i2h[:, I:].T,                                            # (H, H)
        "w1hu": w_i2u[:, I:].T,                                            # (H, H)
        # Layer 2 recurrent head (u2h).
        "wuhu": w_u2h[:, :H].T,                                            # (H, H)
        "wuhh": w_u2h[:, H:].T,                                            # (H, H)
        "buh": b_u2h.reshape(1, H),                                        # (1, H)
        # Output head (u2o): pad O -> OP with zero weights and -1e9 bias columns.
        "wuou": jnp.pad(w_u2o[:, :H].T, ((0, 0), (0, pad))),               # (H, OP)
        "wuoh": jnp.pad(w_u2o[:, H:].T, ((0, 0), (0, pad))),               # (H, OP)
        "buo": jnp.pad(b_u2o, (0, pad), constant_values=-1e9).reshape(1, OP),
    }
    return packed


@partial(jax.jit, static_argnames=("output_size",))
def rnn2_forward(x, hidden, packed, *, output_size):
    """x: (T, B, I) f32, hidden: (2, B, H) f32 -> (B, output_size) log-probs."""
    T, B, I = x.shape
    _, _, H = hidden.shape
    OP = packed["buo"].shape[1]

    # Pad batch to a full sublane group (8 rows) so every per-step operand and
    # the output are cleanly (8, 128)-aligned. Padded rows are zero and sliced
    # off at the end.
    BP = 8 * pl.cdiv(B, 8)
    x_p = jnp.pad(x, ((0, 0), (0, BP - B), (0, 0)))
    h_p = jnp.pad(hidden, ((0, 0), (0, BP - B), (0, 0)))
    x_flat = x_p.reshape(T * BP, I)   # rows 8-aligned per timestep

    vmem = lambda: pl.BlockSpec(memory_space=pltpu.MemorySpace.VMEM)
    out_padded = pl.pallas_call(
        rnn2_kernel,
        out_shape=jax.ShapeDtypeStruct((BP, OP), jnp.float32),
        in_specs=[vmem() for _ in range(12)],
        out_specs=vmem(),
        scratch_shapes=[
            pltpu.VMEM((T * BP, H), jnp.float32),   # i2h x-contribution slab
            pltpu.VMEM((T * BP, H), jnp.float32),   # i2u x-contribution slab
        ],
    )(x_flat, h_p,
      packed["w1x"], packed["b1"],
      packed["w1hh"], packed["w1hu"],
      packed["wuhu"], packed["wuhh"], packed["buh"],
      packed["wuou"], packed["wuoh"], packed["buo"])

    return out_padded[:B, :output_size]


def rnn2_reference(x, hidden, params):
    """Pure-JAX reference mirroring the PyTorch forward."""
    w_i2h, b_i2h = params["i2h"]
    w_i2u, b_i2u = params["i2u"]
    w_u2h, b_u2h = params["u2h"]
    w_u2o, b_u2o = params["u2o"]
    output = None
    for i in range(x.shape[0]):
        combined = jnp.concatenate([x[i], hidden[0]], axis=1)
        hidden0 = combined @ w_i2h.T + b_i2h
        u = jnp.maximum(combined @ w_i2u.T + b_i2u, 0.0)
        combined2 = jnp.concatenate([u, hidden[1]], axis=1)
        hidden1 = combined2 @ w_u2h.T + b_u2h
        output = combined2 @ w_u2o.T + b_u2o
        hidden = jnp.stack([hidden0, hidden1], axis=0)
    return jax.nn.log_softmax(output, axis=1)


def init_params(key, input_size, hidden_size, output_size):
    """Deterministic nn.Linear-style uniform init."""
    def linear(k, out_f, in_f):
        kw, kb = jax.random.split(k)
        bound = 1.0 / jnp.sqrt(in_f)
        w = jax.random.uniform(kw, (out_f, in_f), jnp.float32, -bound, bound)
        b = jax.random.uniform(kb, (out_f,), jnp.float32, -bound, bound)
        return w, b

    k1, k2, k3, k4 = jax.random.split(key, 4)
    return {
        "i2h": linear(k1, hidden_size, input_size + hidden_size),
        "i2u": linear(k2, hidden_size, input_size + hidden_size),
        "u2h": linear(k3, hidden_size, hidden_size + hidden_size),
        "u2o": linear(k4, output_size, hidden_size + hidden_size),
    }


if __name__ == "__main__":
    INPUT, HIDDEN, OUTPUT = 32, 32, 16
    SEQ, BATCH = 8, 4

    key = jax.random.PRNGKey(0)
    kp, kx = jax.random.split(key)
    params = init_params(kp, INPUT, HIDDEN, OUTPUT)
    # Weight repacking done ONCE at init time (not per forward call).
    packed = pack_params(params, INPUT, HIDDEN, OUTPUT)

    x = jax.random.normal(kx, (SEQ, BATCH, INPUT), jnp.float32)
    hidden = jnp.zeros((2, BATCH, HIDDEN), jnp.float32)   # initHidden

    out = rnn2_forward(x, hidden, packed, output_size=OUTPUT)
    out = jax.block_until_ready(out)

    ref = rnn2_reference(x, hidden, params)
    assert out.shape == (BATCH, OUTPUT)
    assert jnp.allclose(out, ref, atol=1e-4, rtol=1e-4), (
        f"max abs err {jnp.max(jnp.abs(out - ref))}")

    print("KERNEL_OK")
</pallas_src>

<mosaic_0001>
module attributes {stable_mosaic.version = 11 : i64} {
  func.func @rnn2_kernel(%arg0: memref<64x32xf32, #tpu.memory_space<vmem>>, %arg1: memref<2x8x32xf32, #tpu.memory_space<vmem>>, %arg2: memref<32x64xf32, #tpu.memory_space<vmem>>, %arg3: memref<1x64xf32, #tpu.memory_space<vmem>>, %arg4: memref<32x32xf32, #tpu.memory_space<vmem>>, %arg5: memref<32x32xf32, #tpu.memory_space<vmem>>, %arg6: memref<32x32xf32, #tpu.memory_space<vmem>>, %arg7: memref<32x32xf32, #tpu.memory_space<vmem>>, %arg8: memref<1x32xf32, #tpu.memory_space<vmem>>, %arg9: memref<32x128xf32, #tpu.memory_space<vmem>>, %arg10: memref<32x128xf32, #tpu.memory_space<vmem>>, %arg11: memref<1x128xf32, #tpu.memory_space<vmem>>, %arg12: memref<8x128xf32, #tpu.memory_space<vmem>>, %arg13: memref<64x32xf32, #tpu.memory_space<vmem>>, %arg14: memref<64x32xf32, #tpu.memory_space<vmem>>) attributes {dimension_semantics = [], scalar_prefetch = 0 : i64, scratch_operands = 2 : i64, tpu.core_type = #tpu.core_type<tc>} {
    %c0 = arith.constant 0 : index
    %c0_0 = arith.constant 0 : index
    %0 = vector.load %arg0[%c0, %c0_0] : memref<64x32xf32, #tpu.memory_space<vmem>>, vector<64x32xf32>
    %c0_1 = arith.constant 0 : index
    %c0_2 = arith.constant 0 : index
    %1 = vector.load %arg2[%c0_1, %c0_2] : memref<32x64xf32, #tpu.memory_space<vmem>>, vector<32x64xf32>
    %cst = arith.constant dense<0.000000e+00> : vector<64x64xf32>
    %2 = tpu.matmul %0, %1, %cst {dimension_numbers = #tpu.dot_dimension_numbers<[1], [0], [0], [1], [0, 0, 1, 1], [], []>} : vector<64x32xf32>, vector<32x64xf32>, vector<64x64xf32> -> vector<64x64xf32>
    %c0_3 = arith.constant 0 : index
    %c0_4 = arith.constant 0 : index
    %3 = vector.load %arg3[%c0_3, %c0_4] : memref<1x64xf32, #tpu.memory_space<vmem>>, vector<1x64xf32>
    %4 = vector.broadcast %3 : vector<1x64xf32> to vector<64x64xf32>
    %5 = arith.addf %2, %4 : vector<64x64xf32>
    %6 = vector.extract_strided_slice %5 {offsets = [0, 0], sizes = [64, 32], strides = [1, 1]} : vector<64x64xf32> to vector<64x32xf32>
    %c0_5 = arith.constant 0 : index
    %c0_6 = arith.constant 0 : index
    %7 = vector.load %arg13[%c0_5, %c0_6] : memref<64x32xf32, #tpu.memory_space<vmem>>, vector<64x32xf32>
    tpu.vector_store %arg13[%c0_5, %c0_6], %6 {strides = array<i32>} : memref<64x32xf32, #tpu.memory_space<vmem>>, vector<64x32xf32>,
    %8 = vector.extract_strided_slice %5 {offsets = [0, 32], sizes = [64, 32], strides = [1, 1]} : vector<64x64xf32> to vector<64x32xf32>
    %c0_7 = arith.constant 0 : index
    %c0_8 = arith.constant 0 : index
    %9 = vector.load %arg14[%c0_7, %c0_8] : memref<64x32xf32, #tpu.memory_space<vmem>>, vector<64x32xf32>
    tpu.vector_store %arg14[%c0_7, %c0_8], %8 {strides = array<i32>} : memref<64x32xf32, #tpu.memory_space<vmem>>, vector<64x32xf32>,
    %c0_9 = arith.constant 0 : index
    %c0_10 = arith.constant 0 : index
    %10 = vector.load %arg4[%c0_9, %c0_10] : memref<32x32xf32, #tpu.memory_space<vmem>>, vector<32x32xf32>
    %c0_11 = arith.constant 0 : index
    %c0_12 = arith.constant 0 : index
    %11 = vector.load %arg5[%c0_11, %c0_12] : memref<32x32xf32, #tpu.memory_space<vmem>>, vector<32x32xf32>
    %c0_13 = arith.constant 0 : index
    %c0_14 = arith.constant 0 : index
    %12 = vector.load %arg6[%c0_13, %c0_14] : memref<32x32xf32, #tpu.memory_space<vmem>>, vector<32x32xf32>
    %c0_15 = arith.constant 0 : index
    %c0_16 = arith.constant 0 : index
    %13 = vector.load %arg7[%c0_15, %c0_16] : memref<32x32xf32, #tpu.memory_space<vmem>>, vector<32x32xf32>
    %c0_17 = arith.constant 0 : index
    %c0_18 = arith.constant 0 : index
    %14 = vector.load %arg8[%c0_17, %c0_18] : memref<1x32xf32, #tpu.memory_space<vmem>>, vector<1x32xf32>
    %c0_19 = arith.constant 0 : index
    %c0_20 = arith.constant 0 : index
    %c0_21 = arith.constant 0 : index
    %15 = vector.load %arg1[%c0_19, %c0_20, %c0_21] : memref<2x8x32xf32, #tpu.memory_space<vmem>>, vector<1x8x32xf32>
    %16 = vector.shape_cast %15 : vector<1x8x32xf32> to vector<8x32xf32>
    %c1 = arith.constant 1 : index
    %c0_22 = arith.constant 0 : index
    %c0_23 = arith.constant 0 : index
    %17 = vector.load %arg1[%c1, %c0_22, %c0_23] : memref<2x8x32xf32, #tpu.memory_space<vmem>>, vector<1x8x32xf32>
    %18 = vector.shape_cast %17 : vector<1x8x32xf32> to vector<8x32xf32>
    %cst_24 = arith.constant 0.000000e+00 : f32
    %19 = vector.broadcast %cst_24 : f32 to vector<8x32xf32>
    %c0_i32 = arith.constant 0 : i32
    %c8_i32 = arith.constant 8 : i32
    %20 = arith.muli %c0_i32, %c8_i32 : i32
    %21 = tpu.assume_multiple %20, 8 : i32
    %22 = arith.index_cast %21 : i32 to index
    %c0_25 = arith.constant 0 : index
    %23 = vector.load %arg13[%22, %c0_25] : memref<64x32xf32, #tpu.memory_space<vmem>>, vector<8x32xf32>
    %24 = arith.index_cast %21 : i32 to index
    %c0_26 = arith.constant 0 : index
    %25 = vector.load %arg14[%24, %c0_26] : memref<64x32xf32, #tpu.memory_space<vmem>>, vector<8x32xf32>
    %cst_27 = arith.constant dense<0.000000e+00> : vector<8x32xf32>
    %26 = tpu.matmul %16, %10, %cst_27 {dimension_numbers = #tpu.dot_dimension_numbers<[1], [0], [0], [1], [0, 0, 1, 1], [], []>} : vector<8x32xf32>, vector<32x32xf32>, vector<8x32xf32> -> vector<8x32xf32>
    %27 = arith.addf %23, %26 : vector<8x32xf32>
    %cst_28 = arith.constant dense<0.000000e+00> : vector<8x32xf32>
    %28 = tpu.matmul %16, %11, %cst_28 {dimension_numbers = #tpu.dot_dimension_numbers<[1], [0], [0], [1], [0, 0, 1, 1], [], []>} : vector<8x32xf32>, vector<32x32xf32>, vector<8x32xf32> -> vector<8x32xf32>
    %29 = arith.addf %25, %28 : vector<8x32xf32>
    %cst_29 = arith.constant 0.000000e+00 : f32
    %30 = vector.broadcast %cst_29 : f32 to vector<8x32xf32>
    %31 = arith.maximumf %29, %30 : vector<8x32xf32>
    %cst_30 = arith.constant dense<0.000000e+00> : vector<8x32xf32>
    %32 = tpu.matmul %31, %12, %cst_30 {dimension_numbers = #tpu.dot_dimension_numbers<[1], [0], [0], [1], [0, 0, 1, 1], [], []>} : vector<8x32xf32>, vector<32x32xf32>, vector<8x32xf32> -> vector<8x32xf32>
    %cst_31 = arith.constant dense<0.000000e+00> : vector<8x32xf32>
    %33 = tpu.matmul %18, %13, %cst_31 {dimension_numbers = #tpu.dot_dimension_numbers<[1], [0], [0], [1], [0, 0, 1, 1], [], []>} : vector<8x32xf32>, vector<32x32xf32>, vector<8x32xf32> -> vector<8x32xf32>
    %34 = arith.addf %32, %33 : vector<8x32xf32>
    %35 = vector.broadcast %14 : vector<1x32xf32> to vector<8x32xf32>
    %36 = arith.addf %34, %35 : vector<8x32xf32>
    %c1_i32 = arith.constant 1 : i32
    %c8_i32_32 = arith.constant 8 : i32
    %37 = arith.muli %c1_i32, %c8_i32_32 : i32
    %38 = tpu.assume_multiple %37, 8 : i32
    %39 = arith.index_cast %38 : i32 to index
    %c0_33 = arith.constant 0 : index
    %40 = vector.load %arg13[%39, %c0_33] : memref<64x32xf32, #tpu.memory_space<vmem>>, vector<8x32xf32>
    %41 = arith.index_cast %38 : i32 to index
    %c0_34 = arith.constant 0 : index
    %42 = vector.load %arg14[%41, %c0_34] : memref<64x32xf32, #tpu.memory_space<vmem>>, vector<8x32xf32>
    %cst_35 = arith.constant dense<0.000000e+00> : vector<8x32xf32>
    %43 = tpu.matmul %27, %10, %cst_35 {dimension_numbers = #tpu.dot_dimension_numbers<[1], [0], [0], [1], [0, 0, 1, 1], [], []>} : vector<8x32xf32>, vector<32x32xf32>, vector<8x32xf32> -> vector<8x32xf32>
    %44 = arith.addf %40, %43 : vector<8x32xf32>
    %cst_36 = arith.constant dense<0.000000e+00> : vector<8x32xf32>
    %45 = tpu.matmul %27, %11, %cst_36 {dimension_numbers = #tpu.dot_dimension_numbers<[1], [0], [0], [1], [0, 0, 1, 1], [], []>} : vector<8x32xf32>, vector<32x32xf32>, vector<8x32xf32> -> vector<8x32xf32>
    %46 = arith.addf %42, %45 : vector<8x32xf32>
    %cst_37 = arith.constant 0.000000e+00 : f32
    %47 = vector.broadcast %cst_37 : f32 to vector<8x32xf32>
    %48 = arith.maximumf %46, %47 : vector<8x32xf32>
    %cst_38 = arith.constant dense<0.000000e+00> : vector<8x32xf32>
    %49 = tpu.matmul %48, %12, %cst_38 {dimension_numbers = #tpu.dot_dimension_numbers<[1], [0], [0], [1], [0, 0, 1, 1], [], []>} : vector<8x32xf32>, vector<32x32xf32>, vector<8x32xf32> -> vector<8x32xf32>
    %cst_39 = arith.constant dense<0.000000e+00> : vector<8x32xf32>
    %50 = tpu.matmul %36, %13, %cst_39 {dimension_numbers = #tpu.dot_dimension_numbers<[1], [0], [0], [1], [0, 0, 1, 1], [], []>} : vector<8x32xf32>, vector<32x32xf32>, vector<8x32xf32> -> vector<8x32xf32>
    %51 = arith.addf %49, %50 : vector<8x32xf32>
    %52 = vector.broadcast %14 : vector<1x32xf32> to vector<8x32xf32>
    %53 = arith.addf %51, %52 : vector<8x32xf32>
    %c2_i32 = arith.constant 2 : i32
    %c8_i32_40 = arith.constant 8 : i32
    %54 = arith.muli %c2_i32, %c8_i32_40 : i32
    %55 = tpu.assume_multiple %54, 8 : i32
    %56 = arith.index_cast %55 : i32 to index
    %c0_41 = arith.constant 0 : index
    %57 = vector.load %arg13[%56, %c0_41] : memref<64x32xf32, #tpu.memory_space<vmem>>, vector<8x32xf32>
    %58 = arith.index_cast %55 : i32 to index
    %c0_42 = arith.constant 0 : index
    %59 = vector.load %arg14[%58, %c0_42] : memref<64x32xf32, #tpu.memory_space<vmem>>, vector<8x32xf32>
    %cst_43 = arith.constant dense<0.000000e+00> : vector<8x32xf32>
    %60 = tpu.matmul %44, %10, %cst_43 {dimension_numbers = #tpu.dot_dimension_numbers<[1], [0], [0], [1], [0, 0, 1, 1], [], []>} : vector<8x32xf32>, vector<32x32xf32>, vector<8x32xf32> -> vector<8x32xf32>
    %61 = arith.addf %57, %60 : vector<8x32xf32>
    %cst_44 = arith.constant dense<0.000000e+00> : vector<8x32xf32>
    %62 = tpu.matmul %44, %11, %cst_44 {dimension_numbers = #tpu.dot_dimension_numbers<[1], [0], [0], [1], [0, 0, 1, 1], [], []>} : vector<8x32xf32>, vector<32x32xf32>, vector<8x32xf32> -> vector<8x32xf32>
    %63 = arith.addf %59, %62 : vector<8x32xf32>
    %cst_45 = arith.constant 0.000000e+00 : f32
    %64 = vector.broadcast %cst_45 : f32 to vector<8x32xf32>
    %65 = arith.maximumf %63, %64 : vector<8x32xf32>
    %cst_46 = arith.constant dense<0.000000e+00> : vector<8x32xf32>
    %66 = tpu.matmul %65, %12, %cst_46 {dimension_numbers = #tpu.dot_dimension_numbers<[1], [0], [0], [1], [0, 0, 1, 1], [], []>} : vector<8x32xf32>, vector<32x32xf32>, vector<8x32xf32> -> vector<8x32xf32>
    %cst_47 = arith.constant dense<0.000000e+00> : vector<8x32xf32>
    %67 = tpu.matmul %53, %13, %cst_47 {dimension_numbers = #tpu.dot_dimension_numbers<[1], [0], [0], [1], [0, 0, 1, 1], [], []>} : vector<8x32xf32>, vector<32x32xf32>, vector<8x32xf32> -> vector<8x32xf32>
    %68 = arith.addf %66, %67 : vector<8x32xf32>
    %69 = vector.broadcast %14 : vector<1x32xf32> to vector<8x32xf32>
    %70 = arith.addf %68, %69 : vector<8x32xf32>
    %c3_i32 = arith.constant 3 : i32
    %c8_i32_48 = arith.constant 8 : i32
    %71 = arith.muli %c3_i32, %c8_i32_48 : i32
    %72 = tpu.assume_multiple %71, 8 : i32
    %73 = arith.index_cast %72 : i32 to index
    %c0_49 = arith.constant 0 : index
    %74 = vector.load %arg13[%73, %c0_49] : memref<64x32xf32, #tpu.memory_space<vmem>>, vector<8x32xf32>
    %75 = arith.index_cast %72 : i32 to index
    %c0_50 = arith.constant 0 : index
    %76 = vector.load %arg14[%75, %c0_50] : memref<64x32xf32, #tpu.memory_space<vmem>>, vector<8x32xf32>
    %cst_51 = arith.constant dense<0.000000e+00> : vector<8x32xf32>
    %77 = tpu.matmul %61, %10, %cst_51 {dimension_numbers = #tpu.dot_dimension_numbers<[1], [0], [0], [1], [0, 0, 1, 1], [], []>} : vector<8x32xf32>, vector<32x32xf32>, vector<8x32xf32> -> vector<8x32xf32>
    %78 = arith.addf %74, %77 : vector<8x32xf32>
    %cst_52 = arith.constant dense<0.000000e+00> : vector<8x32xf32>
    %79 = tpu.matmul %61, %11, %cst_52 {dimension_numbers = #tpu.dot_dimension_numbers<[1], [0], [0], [1], [0, 0, 1, 1], [], []>} : vector<8x32xf32>, vector<32x32xf32>, vector<8x32xf32> -> vector<8x32xf32>
    %80 = arith.addf %76, %79 : vector<8x32xf32>
    %cst_53 = arith.constant 0.000000e+00 : f32
    %81 = vector.broadcast %cst_53 : f32 to vector<8x32xf32>
    %82 = arith.maximumf %80, %81 : vector<8x32xf32>
    %cst_54 = arith.constant dense<0.000000e+00> : vector<8x32xf32>
    %83 = tpu.matmul %82, %12, %cst_54 {dimension_numbers = #tpu.dot_dimension_numbers<[1], [0], [0], [1], [0, 0, 1, 1], [], []>} : vector<8x32xf32>, vector<32x32xf32>, vector<8x32xf32> -> vector<8x32xf32>
    %cst_55 = arith.constant dense<0.000000e+00> : vector<8x32xf32>
    %84 = tpu.matmul %70, %13, %cst_55 {dimension_numbers = #tpu.dot_dimension_numbers<[1], [0], [0], [1], [0, 0, 1, 1], [], []>} : vector<8x32xf32>, vector<32x32xf32>, vector<8x32xf32> -> vector<8x32xf32>
    %85 = arith.addf %83, %84 : vector<8x32xf32>
    %86 = vector.broadcast %14 : vector<1x32xf32> to vector<8x32xf32>
    %87 = arith.addf %85, %86 : vector<8x32xf32>
    %c4_i32 = arith.constant 4 : i32
    %c8_i32_56 = arith.constant 8 : i32
    %88 = arith.muli %c4_i32, %c8_i32_56 : i32
    %89 = tpu.assume_multiple %88, 8 : i32
    %90 = arith.index_cast %89 : i32 to index
    %c0_57 = arith.constant 0 : index
    %91 = vector.load %arg13[%90, %c0_57] : memref<64x32xf32, #tpu.memory_space<vmem>>, vector<8x32xf32>
    %92 = arith.index_cast %89 : i32 to index
    %c0_58 = arith.constant 0 : index
    %93 = vector.load %arg14[%92, %c0_58] : memref<64x32xf32, #tpu.memory_space<vmem>>, vector<8x32xf32>
    %cst_59 = arith.constant dense<0.000000e+00> : vector<8x32xf32>
    %94 = tpu.matmul %78, %10, %cst_59 {dimension_numbers = #tpu.dot_dimension_numbers<[1], [0], [0], [1], [0, 0, 1, 1], [], []>} : vector<8x32xf32>, vector<32x32xf32>, vector<8x32xf32> -> vector<8x32xf32>
    %95 = arith.addf %91, %94 : vector<8x32xf32>
    %cst_60 = arith.constant dense<0.000000e+00> : vector<8x32xf32>
    %96 = tpu.matmul %78, %11, %cst_60 {dimension_numbers = #tpu.dot_dimension_numbers<[1], [0], [0], [1], [0, 0, 1, 1], [], []>} : vector<8x32xf32>, vector<32x32xf32>, vector<8x32xf32> -> vector<8x32xf32>
    %97 = arith.addf %93, %96 : vector<8x32xf32>
    %cst_61 = arith.constant 0.000000e+00 : f32
    %98 = vector.broadcast %cst_61 : f32 to vector<8x32xf32>
    %99 = arith.maximumf %97, %98 : vector<8x32xf32>
    %cst_62 = arith.constant dense<0.000000e+00> : vector<8x32xf32>
    %100 = tpu.matmul %99, %12, %cst_62 {dimension_numbers = #tpu.dot_dimension_numbers<[1], [0], [0], [1], [0, 0, 1, 1], [], []>} : vector<8x32xf32>, vector<32x32xf32>, vector<8x32xf32> -> vector<8x32xf32>
    %cst_63 = arith.constant dense<0.000000e+00> : vector<8x32xf32>
    %101 = tpu.matmul %87, %13, %cst_63 {dimension_numbers = #tpu.dot_dimension_numbers<[1], [0], [0], [1], [0, 0, 1, 1], [], []>} : vector<8x32xf32>, vector<32x32xf32>, vector<8x32xf32> -> vector<8x32xf32>
    %102 = arith.addf %100, %101 : vector<8x32xf32>
    %103 = vector.broadcast %14 : vector<1x32xf32> to vector<8x32xf32>
    %104 = arith.addf %102, %103 : vector<8x32xf32>
    %c5_i32 = arith.constant 5 : i32
    %c8_i32_64 = arith.constant 8 : i32
    %105 = arith.muli %c5_i32, %c8_i32_64 : i32
    %106 = tpu.assume_multiple %105, 8 : i32
    %107 = arith.index_cast %106 : i32 to index
    %c0_65 = arith.constant 0 : index
    %108 = vector.load %arg13[%107, %c0_65] : memref<64x32xf32, #tpu.memory_space<vmem>>, vector<8x32xf32>
    %109 = arith.index_cast %106 : i32 to index
    %c0_66 = arith.constant 0 : index
    %110 = vector.load %arg14[%109, %c0_66] : memref<64x32xf32, #tpu.memory_space<vmem>>, vector<8x32xf32>
    %cst_67 = arith.constant dense<0.000000e+00> : vector<8x32xf32>
    %111 = tpu.matmul %95, %10, %cst_67 {dimension_numbers = #tpu.dot_dimension_numbers<[1], [0], [0], [1], [0, 0, 1, 1], [], []>} : vector<8x32xf32>, vector<32x32xf32>, vector<8x32xf32> -> vector<8x32xf32>
    %112 = arith.addf %108, %111 : vector<8x32xf32>
    %cst_68 = arith.constant dense<0.000000e+00> : vector<8x32xf32>
    %113 = tpu.matmul %95, %11, %cst_68 {dimension_numbers = #tpu.dot_dimension_numbers<[1], [0], [0], [1], [0, 0, 1, 1], [], []>} : vector<8x32xf32>, vector<32x32xf32>, vector<8x32xf32> -> vector<8x32xf32>
    %114 = arith.addf %110, %113 : vector<8x32xf32>
    %cst_69 = arith.constant 0.000000e+00 : f32
    %115 = vector.broadcast %cst_69 : f32 to vector<8x32xf32>
    %116 = arith.maximumf %114, %115 : vector<8x32xf32>
    %cst_70 = arith.constant dense<0.000000e+00> : vector<8x32xf32>
    %117 = tpu.matmul %116, %12, %cst_70 {dimension_numbers = #tpu.dot_dimension_numbers<[1], [0], [0], [1], [0, 0, 1, 1], [], []>} : vector<8x32xf32>, vector<32x32xf32>, vector<8x32xf32> -> vector<8x32xf32>
    %cst_71 = arith.constant dense<0.000000e+00> : vector<8x32xf32>
    %118 = tpu.matmul %104, %13, %cst_71 {dimension_numbers = #tpu.dot_dimension_numbers<[1], [0], [0], [1], [0, 0, 1, 1], [], []>} : vector<8x32xf32>, vector<32x32xf32>, vector<8x32xf32> -> vector<8x32xf32>
    %119 = arith.addf %117, %118 : vector<8x32xf32>
    %120 = vector.broadcast %14 : vector<1x32xf32> to vector<8x32xf32>
    %121 = arith.addf %119, %120 : vector<8x32xf32>
    %c6_i32 = arith.constant 6 : i32
    %c8_i32_72 = arith.constant 8 : i32
    %122 = arith.muli %c6_i32, %c8_i32_72 : i32
    %123 = tpu.assume_multiple %122, 8 : i32
    %124 = arith.index_cast %123 : i32 to index
    %c0_73 = arith.constant 0 : index
    %125 = vector.load %arg13[%124, %c0_73] : memref<64x32xf32, #tpu.memory_space<vmem>>, vector<8x32xf32>
    %126 = arith.index_cast %123 : i32 to index
    %c0_74 = arith.constant 0 : index
    %127 = vector.load %arg14[%126, %c0_74] : memref<64x32xf32, #tpu.memory_space<vmem>>, vector<8x32xf32>
    %cst_75 = arith.constant dense<0.000000e+00> : vector<8x32xf32>
    %128 = tpu.matmul %112, %10, %cst_75 {dimension_numbers = #tpu.dot_dimension_numbers<[1], [0], [0], [1], [0, 0, 1, 1], [], []>} : vector<8x32xf32>, vector<32x32xf32>, vector<8x32xf32> -> vector<8x32xf32>
    %129 = arith.addf %125, %128 : vector<8x32xf32>
    %cst_76 = arith.constant dense<0.000000e+00> : vector<8x32xf32>
    %130 = tpu.matmul %112, %11, %cst_76 {dimension_numbers = #tpu.dot_dimension_numbers<[1], [0], [0], [1], [0, 0, 1, 1], [], []>} : vector<8x32xf32>, vector<32x32xf32>, vector<8x32xf32> -> vector<8x32xf32>
    %131 = arith.addf %127, %130 : vector<8x32xf32>
    %cst_77 = arith.constant 0.000000e+00 : f32
    %132 = vector.broadcast %cst_77 : f32 to vector<8x32xf32>
    %133 = arith.maximumf %131, %132 : vector<8x32xf32>
    %cst_78 = arith.constant dense<0.000000e+00> : vector<8x32xf32>
    %134 = tpu.matmul %133, %12, %cst_78 {dimension_numbers = #tpu.dot_dimension_numbers<[1], [0], [0], [1], [0, 0, 1, 1], [], []>} : vector<8x32xf32>, vector<32x32xf32>, vector<8x32xf32> -> vector<8x32xf32>
    %cst_79 = arith.constant dense<0.000000e+00> : vector<8x32xf32>
    %135 = tpu.matmul %121, %13, %cst_79 {dimension_numbers = #tpu.dot_dimension_numbers<[1], [0], [0], [1], [0, 0, 1, 1], [], []>} : vector<8x32xf32>, vector<32x32xf32>, vector<8x32xf32> -> vector<8x32xf32>
    %136 = arith.addf %134, %135 : vector<8x32xf32>
    %137 = vector.broadcast %14 : vector<1x32xf32> to vector<8x32xf32>
    %138 = arith.addf %136, %137 : vector<8x32xf32>
    %c7_i32 = arith.constant 7 : i32
    %c8_i32_80 = arith.constant 8 : i32
    %139 = arith.muli %c7_i32, %c8_i32_80 : i32
    %140 = tpu.assume_multiple %139, 8 : i32
    %141 = arith.index_cast %140 : i32 to index
    %c0_81 = arith.constant 0 : index
    %142 = vector.load %arg13[%141, %c0_81] : memref<64x32xf32, #tpu.memory_space<vmem>>, vector<8x32xf32>
    %143 = arith.index_cast %140 : i32 to index
    %c0_82 = arith.constant 0 : index
    %144 = vector.load %arg14[%143, %c0_82] : memref<64x32xf32, #tpu.memory_space<vmem>>, vector<8x32xf32>
    %cst_83 = arith.constant dense<0.000000e+00> : vector<8x32xf32>
    %145 = tpu.matmul %129, %10, %cst_83 {dimension_numbers = #tpu.dot_dimension_numbers<[1], [0], [0], [1], [0, 0, 1, 1], [], []>} : vector<8x32xf32>, vector<32x32xf32>, vector<8x32xf32> -> vector<8x32xf32>
    %146 = arith.addf %142, %145 : vector<8x32xf32>
    %cst_84 = arith.constant dense<0.000000e+00> : vector<8x32xf32>
    %147 = tpu.matmul %129, %11, %cst_84 {dimension_numbers = #tpu.dot_dimension_numbers<[1], [0], [0], [1], [0, 0, 1, 1], [], []>} : vector<8x32xf32>, vector<32x32xf32>, vector<8x32xf32> -> vector<8x32xf32>
    %148 = arith.addf %144, %147 : vector<8x32xf32>
    %cst_85 = arith.constant 0.000000e+00 : f32
    %149 = vector.broadcast %cst_85 : f32 to vector<8x32xf32>
    %150 = arith.maximumf %148, %149 : vector<8x32xf32>
    %cst_86 = arith.constant dense<0.000000e+00> : vector<8x32xf32>
    %151 = tpu.matmul %150, %12, %cst_86 {dimension_numbers = #tpu.dot_dimension_numbers<[1], [0], [0], [1], [0, 0, 1, 1], [], []>} : vector<8x32xf32>, vector<32x32xf32>, vector<8x32xf32> -> vector<8x32xf32>
    %cst_87 = arith.constant dense<0.000000e+00> : vector<8x32xf32>
    %152 = tpu.matmul %138, %13, %cst_87 {dimension_numbers = #tpu.dot_dimension_numbers<[1], [0], [0], [1], [0, 0, 1, 1], [], []>} : vector<8x32xf32>, vector<32x32xf32>, vector<8x32xf32> -> vector<8x32xf32>
    %153 = arith.addf %151, %152 : vector<8x32xf32>
    %154 = vector.broadcast %14 : vector<1x32xf32> to vector<8x32xf32>
    %155 = arith.addf %153, %154 : vector<8x32xf32>
    %c8_i32_88 = arith.constant 8 : i32
    %c0_89 = arith.constant 0 : index
    %c0_90 = arith.constant 0 : index
    %156 = vector.load %arg9[%c0_89, %c0_90] : memref<32x128xf32, #tpu.memory_space<vmem>>, vector<32x128xf32>
    %cst_91 = arith.constant dense<0.000000e+00> : vector<8x128xf32>
    %157 = tpu.matmul %150, %156, %cst_91 {dimension_numbers = #tpu.dot_dimension_numbers<[1], [0], [0], [1], [0, 0, 1, 1], [], []>} : vector<8x32xf32>, vector<32x128xf32>, vector<8x128xf32> -> vector<8x128xf32>
    %c0_92 = arith.constant 0 : index
    %c0_93 = arith.constant 0 : index
    %158 = vector.load %arg10[%c0_92, %c0_93] : memref<32x128xf32, #tpu.memory_space<vmem>>, vector<32x128xf32>
    %cst_94 = arith.constant dense<0.000000e+00> : vector<8x128xf32>
    %159 = tpu.matmul %138, %158, %cst_94 {dimension_numbers = #tpu.dot_dimension_numbers<[1], [0], [0], [1], [0, 0, 1, 1], [], []>} : vector<8x32xf32>, vector<32x128xf32>, vector<8x128xf32> -> vector<8x128xf32>
    %160 = arith.addf %157, %159 : vector<8x128xf32>
    %c0_95 = arith.constant 0 : index
    %c0_96 = arith.constant 0 : index
    %161 = vector.load %arg11[%c0_95, %c0_96] : memref<1x128xf32, #tpu.memory_space<vmem>>, vector<1x128xf32>
    %162 = vector.broadcast %161 : vector<1x128xf32> to vector<8x128xf32>
    %163 = arith.addf %160, %162 : vector<8x128xf32>
    %cst_97 = arith.constant dense<0xFF800000> : vector<8xf32>
    %164 = vector.multi_reduction <maximumf>, %163, %cst_97 [1] : vector<8x128xf32> to vector<8xf32>
    %165 = vector.shape_cast %164 : vector<8xf32> to vector<8x1xf32>
    %166 = vector.broadcast %165 : vector<8x1xf32> to vector<8x128xf32>
    %167 = arith.subf %163, %166 : vector<8x128xf32>
    %168 = math.exp %167 : vector<8x128xf32>
    %cst_98 = arith.constant dense<0.000000e+00> : vector<8xf32>
    %169 = vector.multi_reduction <add>, %168, %cst_98 [1] : vector<8x128xf32> to vector<8xf32>
    %170 = vector.shape_cast %169 : vector<8xf32> to vector<8x1xf32>
    %171 = math.log %170 : vector<8x1xf32>
    %172 = vector.broadcast %171 : vector<8x1xf32> to vector<8x128xf32>
    %173 = arith.subf %167, %172 : vector<8x128xf32>
    %c0_99 = arith.constant 0 : index
    %c0_100 = arith.constant 0 : index
    %174 = vector.load %arg12[%c0_99, %c0_100] : memref<8x128xf32, #tpu.memory_space<vmem>>, vector<8x128xf32>
    tpu.vector_store %arg12[%c0_99, %c0_100], %173 {strides = array<i32>} : memref<8x128xf32, #tpu.memory_space<vmem>>, vector<8x128xf32>,
    return
  }
}

</mosaic_0001>

<bundles_post_ra>
// kernel: rnn2_forward.1
= control target key start
LH: loop header
LB: loop body
LE: loop exit
PB: predicated region body
PF: predicated region fallthrough
CT: control target
= control target key end

     0   :  { %17 = vsyncpa [#allocation5], 0  ;;  %s3968_s0 = inlined_call_operand.vmem [shape: f32[64,32], index: 0, kind: input, shape index: {}]   ;;  %s3969_s1 = inlined_call_operand.vmem [shape: f32[2,8,32], index: 1, kind: input, shape index: {}]   ;;  %s3970_s2 = inlined_call_operand.vmem [shape: f32[32,64], index: 2, kind: input, shape index: {}]   ;;  %s3971_s3 = inlined_call_operand.hbm [shape: f32[1,64], index: 3, kind: input, shape index: {}]   ;;  %s3972_s4 = inlined_call_operand.vmem [shape: f32[32,32], index: 4, kind: input, shape index: {}]   ;;  %s3973_s5 = inlined_call_operand.vmem [shape: f32[32,32], index: 5, kind: input, shape index: {}]   ;;  %s3974_s6 = inlined_call_operand.vmem [shape: f32[32,32], index: 6, kind: input, shape index: {}]   ;;  %s3975_s7 = inlined_call_operand.hbm [shape: f32[32,32], index: 7, kind: input, shape index: {}]   ;;  %s3976_s8 = inlined_call_operand.vmem [shape: f32[1,32], index: 8, kind: input, shape index: {}]   ;;  %s3977_s9 = inlined_call_operand.vmem [shape: f32[32,128], index: 9, kind: input, shape index: {}]   ;;  %s3978_s10 = inlined_call_operand.hbm [shape: f32[32,128], index: 10, kind: input, shape index: {}]   ;;  %s3979_s11 = inlined_call_operand.vmem [shape: f32[1,128], index: 11, kind: input, shape index: {}]   ;;  %s3980_s12 = inlined_call_operand.vmem [shape: f32[8,128], index: 12, kind: output, shape index: {}]  }
   0x1   :  { %18 = vsyncpa [#allocation7], 0  ;;  %s3484_s21 = smov [#allocation6]   ;;  %s3414_s25 = scalar_lea.hbm %s3975_s7, 512 }
   0x2   :  { %s46_s22 = sshll.u32 %s3484_s21, 4  ;;  %p3415_p0 = scmp.ne.s32.totalorder %s3975_s7, %s3414_s25  ;;  %s47_s22 = int_to_ptr.vmem [resolvable:$true] %s46_s22 }
   0x3   :  { %p3418_p1 = scmp.lt.u32.totalorder %s3414_s25, %s3975_s7 }
   0x5   :  { %p3420_p2 = pnand %p3418_p1, %p3415_p0 }
   0x7   :  { %3423 = shalt.err (!%p3420_p2)
}
   0x8   :  { %s3424_s30 = scalar_lea.vmem %s47_s22, 512  ;;  %p3429_p4 = scmp.lt.s32.totalorder %s47_s22, %s47_s22 }
   0x9   :  { %p3425_p3 = scmp.ne.s32.totalorder %s47_s22, %s3424_s30  ;;  %p3430_p5 = scmp.lt.s32.totalorder %s3424_s30, %s3424_s30 }
   0xb   :  { %p3431_p6 = por %p3430_p5, %p3429_p4 }
   0xd   :  { %p3432_p7 = pnand %p3431_p6, %p3425_p3 }
   0xf   :  { %3435 = shalt.err (!%p3432_p7)
}
  0x10   :  { %s3485_s13 = smov 128   ;;  %s3486_s14 = smov 8  }
  0x11   :  { %52 = dma.hbm_to_vmem [thread:$0]  %s3975_s7, 512, %s47_s22, [#allocation7], %s3485_s13, %s3485_s13, %s3486_s14  }
  0x12   :  { %s3487_s17 = smov [#allocation4]   ;;  %s3488_s19 = smov [#allocation8]  }
  0x13   :  { %s31_s18 = sshll.u32 %s3487_s17, 4  ;;  %s62_s20 = sshll.u32 %s3488_s19, 4  ;;  %s32_s18 = int_to_ptr.vmem [resolvable:$true] %s31_s18  ;;  %s63_s20 = int_to_ptr.vmem [resolvable:$true] %s62_s20 }
  0x14   :  { %s3436_s24 = scalar_lea.hbm %s3971_s3, 16 }
  0x15   :  { %p3437_p8 = scmp.ne.s32.totalorder %s3971_s3, %s3436_s24  ;;  %p3440_p9 = scmp.lt.u32.totalorder %s3436_s24, %s3971_s3 }
  0x17   :  { %p3442_p10 = pnand %p3440_p9, %p3437_p8 }
  0x19   :  { %3445 = shalt.err (!%p3442_p10)
}
  0x1a   :  { %s3446_s7 = scalar_lea.vmem %s32_s18, 16  ;;  %s3450_s22 = scalar_lea.vmem %s32_s18, 32 }
  0x1b   :  { %p3447_p11 = scmp.ne.s32.totalorder %s32_s18, %s3446_s7  ;;  %p3451_p12 = scmp.lt.s32.totalorder %s32_s18, %s32_s18 }
  0x1c   :  { %p3452_p13 = scmp.lt.s32.totalorder %s3450_s22, %s3446_s7 }
  0x1e   :  { %p3453_p0 = por %p3452_p13, %p3451_p12 }
  0x20   :  { %p3454_p1 = pnand %p3453_p0, %p3447_p11 }
  0x22   :  { %3457 = shalt.err (!%p3454_p1)
}
  0x23   :  { %34 = dma.hbm_to_vmem [thread:$0]  %s3971_s3, 16, %s32_s18, [#allocation5]  }
  0x24   :  { %s3458_s17 = scalar_lea.hbm %s3978_s10, 512 }
  0x25   :  { %p3459_p2 = scmp.ne.s32.totalorder %s3978_s10, %s3458_s17  ;;  %p3462_p3 = scmp.lt.u32.totalorder %s3458_s17, %s3978_s10 }
  0x27   :  { %p3464_p4 = pnand %p3462_p3, %p3459_p2 }
  0x29   :  { %3467 = shalt.err (!%p3464_p4)
}
  0x2a   :  { %s3468_s25 = scalar_lea.vmem %s63_s20, 512  ;;  %p3473_p6 = scmp.lt.s32.totalorder %s63_s20, %s63_s20 }
  0x2b   :  { %p3469_p5 = scmp.ne.s32.totalorder %s63_s20, %s3468_s25  ;;  %p3474_p7 = scmp.lt.s32.totalorder %s3468_s25, %s3468_s25 }
  0x2d   :  { %p3475_p8 = por %p3474_p7, %p3473_p6 }
  0x2f   :  { %p3476_p9 = pnand %p3475_p8, %p3469_p5 }
  0x31   :  { %3479 = shalt.err (!%p3476_p9)
}
  0x32   :  { %68 = dma.hbm_to_vmem [thread:$0]  %s3978_s10, 512, %s63_s20, [#allocation7], %s3485_s13, %s3485_s13, %s3486_s14  }
  0x33   :  { %3480 = dma.done.wait [#allocation5], 16  }
  0x34   :  { %3481 = vsyncadd [#allocation5], 4294967280 }
  0x35   :  { %3482 = dma.done.wait [#allocation7], 1024  }
  0x36   :  { %3483 = vsyncadd [#allocation7], 4294966272  ;;  %v3489_v0 = vmov 0.0|0.0   ;;  %vm3490_vm0 = vmmov 0   ;;  %v3491_v1 = vmov 0.0   ;;  %vm99_vm1 = vcmask 261120  }
  0x37   :  { %3215 = vmatprep.subr.bf16.mxu1 %v3489_v0  ;;  %2874 = vmatprep.mubr.msk.f32.mxu1 %vm3490_vm0, %v3491_v1  ;;  %v88_v2 = vld [vmem:[%s3970_s2] sm:$0xff]  ;;  %v89_v3 = vld [vmem:[%s3970_s2 + $0x8] sm:$0xff]  ;;  %v90_v4 = vld [vmem:[%s3970_s2 + $0x10] sm:$0xff]  ;;  %s3492_s7 = smov 96  }
  0x38   :  { %v3207_v5 = vpack.c.bf16 %v89_v3, %v88_v2  ;;  %v91_v6 = vld [vmem:[%s3970_s2 + $0x18] sm:$0xff]  ;;  %v80_v7 = vld [vmem:[%s3968_s0] sm:$0xff]  ;;  %v278_v10 = vld [vmem:[%s3972_s4 + $0x8] sm:$0xff] }
  0x39   :  { %v3211_v8 = vpack.c.bf16 %v91_v6, %v90_v4  ;;  %2854 = vmatprep.mubr.msk.f32.mxu0 %vm99_vm1, %v80_v7  ;;  %v277_v9 = vld [vmem:[%s3972_s4] sm:$0xff]  ;;  %v279_v11 = vld [vmem:[%s3972_s4 + $0x10] sm:$0xff]  ;;  %v280_v13 = vld [vmem:[%s3972_s4 + $0x18] sm:$0xff] }
  0x3a   :  { %3208 = vmatprep.subr.bf16.mxu0 %v3207_v5  ;;  %v3628_v12 = vpack.c.bf16 %v278_v10, %v277_v9  ;;  %v3634_v14 = vpack.c.bf16 %v280_v13, %v279_v11  ;;  %v281_v15 = vld [vmem:[%s3973_s5] sm:$0xff]  ;;  %v282_v16 = vld [vmem:[%s3973_s5 + $0x8] sm:$0xff]  ;;  %v82_v22 = vld [vmem:[%s3968_s0 + $0x10] sm:$0xff] }
  0x3b   :  { %3210 = vmatpush3.bf16.msra.mxu0 %v3207_v5  ;;  %v289_v17 = vld [vmem:[#allocation6] sm:$0xff]  ;;  %v290_v18 = vld [vmem:[#allocation6 + $0x8] sm:$0xff]  ;;  %v3650_v21 = vpack.c.bf16 %v282_v16, %v281_v15  ;;  %v284_v24 = vld [vmem:[%s3973_s5 + $0x18] sm:$0xff] }
  0x3c   :  { %3212 = vmatprep.subr.bf16.mxu0 %v3211_v8  ;;  %3217 = vmatpush3.bf16.msra.mxu1 %v3628_v12  ;;  %v81_v19 = vld [vmem:[%s3968_s0 + $0x8] sm:$0xff]  ;;  %v294_v20 = vld [vmem:[%s3969_s1] sm:$0xff]  ;;  %v283_v23 = vld [vmem:[%s3973_s5 + $0x10] sm:$0xff]  ;;  %v3663_v25 = vpack.c.bf16 %v290_v18, %v289_v17 }
  0x3d   :  { %3218 = vmatprep.subr.bf16.mxu1 %v3489_v0  ;;  %v83_v26 = vld [vmem:[%s3968_s0 + $0x18] sm:$0xff]  ;;  %v3672_v27 = vpack.c.bf16 %v284_v24, %v283_v23  ;;  %v84_v28 = vld [vmem:[%s3968_s0 + $0x20] sm:$0xff]  ;;  %v85_v29 = vld [vmem:[%s3968_s0 + $0x28] sm:$0xff] }
  0x3e   :  { %v291_v30 = vld [vmem:[#allocation6 + $0x10] sm:$0xff]  ;;  %v292_v31 = vld [vmem:[#allocation6 + $0x18] sm:$0xff]  ;;  %v2645_v35 = vld [vmem:[%s3969_s1 + $0x8] sm:$0xff] }
  0x3f   :  { %3214 = vmatpush3.bf16.msra.mxu0 %v3211_v8  ;;  %v86_v32 = vld [vmem:[%s3968_s0 + $0x30] sm:$0xff]  ;;  %v3696_v33 = vpack.c.bf16 %v292_v31, %v291_v30  ;;  %v87_v34 = vld [vmem:[%s3968_s0 + $0x38] sm:$0xff]  ;;  %v285_v36 = vld [vmem:[%s3974_s6] sm:$0xff] }
  0x40   :  { %3220 = vmatpush3.bf16.msra.mxu1 %v3634_v14  ;;  %3227 = vmatprep.subr.bf16.mxu0 %v3489_v0  ;;  %v286_v37 = vld [vmem:[%s3974_s6 + $0x8] sm:$0xff]  ;;  %v287_v39 = vld [vmem:[%s3974_s6 + $0x10] sm:$0xff]  ;;  %v288_v40 = vld [vmem:[%s3974_s6 + $0x18] sm:$0xff] }
  0x41   :  { %3221 = vmatprep.subr.bf16.mxu1 %v3489_v0  ;;  %v3723_v38 = vpack.c.bf16 %v286_v37, %v285_v36  ;;  %v3733_v41 = vpack.c.bf16 %v288_v40, %v287_v39  ;;  %v2636_v42 = vld [vmem:[#allocation4] ss:$0 sm:$0xff] }
  0x42   :  { %2855 = vmatmul.mubr.msk.f32.vlgmr.msra.gmra.mrb[0].mxu0 %vm99_vm1, %v81_v19 }
  0x43   :  { %2875 = vmatmul.mubr.msk.f32.vlgmr.msra.gmra.mrb[0].mxu1 %vm99_vm1, %v294_v20  ;;  %2857 = vmatprep.mubr.msk.f32.mxu0 %vm99_vm1, %v82_v22 }
  0x44   :  { %3223 = vmatpush3.bf16.msra.mxu1 %v3650_v21  ;;  %2885 = vmatprep.mubr.msk.f32.mxu1 %vm3490_vm0, %v3491_v1 }
  0x45   :  { %3224 = vmatprep.subr.bf16.mxu1 %v3489_v0  ;;  %3229 = vmatpush3.bf16.msra.mxu0 %v3663_v25 }
  0x46   :  { %2858 = vmatmul.mubr.msk.f32.gmra.mrb[2].mxu0 %vm99_vm1, %v83_v26  ;;  %3230 = vmatprep.subr.bf16.mxu0 %v3489_v0 }
  0x47   :  { %2860 = vmatprep.mubr.msk.f32.mxu0 %vm99_vm1, %v84_v28 }
  0x48   :  { %3226 = vmatpush3.bf16.msra.mxu1 %v3672_v27 }
  0x49   :  { %3233 = vmatprep.subr.bf16.mxu1 %v3489_v0  ;;  %3232 = vmatpush3.bf16.msra.mxu0 %v3696_v33 }
  0x4a   :  { %2861 = vmatmul.mubr.msk.f32.gmra.mrb[4].mxu0 %vm99_vm1, %v85_v29  ;;  %3239 = vmatprep.subr.bf16.mxu0 %v3489_v0 }
  0x4b   :  { %2886 = vmatmul.mubr.msk.f32.vlgmr.msra.gmra.mrb[2].mxu1 %vm99_vm1, %v294_v20  ;;  %2863 = vmatprep.mubr.msk.f32.mxu0 %vm99_vm1, %v86_v32  ;;  %v3784_v20 = vld [vmem:[%s3976_s8] ss:$0 sm:$0xff] }
  0x4c   :  { %2907 = vmatprep.mubr.msk.f32.mxu1 %vm3490_vm0, %v3491_v1  ;;  %3235 = vmatpush3.bf16.msra.mxu1 %v3723_v38 }
  0x4d   :  { %3236 = vmatprep.subr.bf16.mxu1 %v3489_v0 }
  0x4e   :  { %2864 = vmatmul.mubr.msk.f32.gmra.mrb[6].mxu0 %vm99_vm1, %v87_v34 }
  0x4f   :  { %2896 = vmatprep.mubr.msk.f32.mxu0 %vm3490_vm0, %v3491_v1 }
  0x50   :  { %3238 = vmatpush3.bf16.msra.mxu1 %v3733_v41 }
  0x51   :  { %3245 = vmatprep.subr.bf16.mxu1 %v3489_v0 }
  0x52   :  { %2897 = vmatmul.mubr.msk.f32.vlgmr.msra.gmra.mrb[8].mxu0 %vm99_vm1, %v2645_v35 }
  0x53   :  { %3241 = vmatpush3.bf16.msra.mxu0 %v3628_v12  ;;  %2918 = vmatprep.mubr.msk.f32.mxu0 %vm3490_vm0, %v3491_v1 }
  0x54   :  { %3242 = vmatprep.subr.bf16.mxu0 %v3489_v0 }
  0x57   :  { %3244 = vmatpush3.bf16.msra.mxu0 %v3634_v14 }
  0x58   :  { %3251 = vmatprep.subr.bf16.mxu0 %v3489_v0 }
 0x115   :  { %v2856_v43 = vpop.f32.mrb[0].mxu0 }
 0x116   :  { %v196_v44 = vadd.f32 %v2856_v43, %v2636_v42  ;;  %v190_v45 = vpop.f32.mrb[1].mxu0  ;;  %v368_v46 = vpop.f32.mrb[0].mxu1 }
 0x117   :  { %v191_v47 = vadd.f32 %v2636_v42, %v190_v45  ;;  %v2876_v48 = vpop.f32.mrb[1].mxu1 }
 0x118   :  { %230 = vst.msk [vmem:[#allocation2 + $0x8] sm:$0xff] %vm99_vm1, %v196_v44 }
 0x119   :  { %229 = vst.msk [vmem:[#allocation2] sm:$0xff] %vm99_vm1, %v191_v47  ;;  %245 = vrot.lane.b32.xlu0 %v191_v47, %s3492_s7  ;;  %v2859_v52 = vpop.f32.mrb[2].mxu0 }
 0x11a   :  { %v206_v54 = vadd.f32 %v2859_v52, %v2636_v42  ;;  %v200_v55 = vpop.f32.mrb[3].mxu0 }
 0x11b   :  { %v201_v56 = vadd.f32 %v2636_v42, %v200_v55 }
 0x11c   :  { %232 = vst.msk [vmem:[#allocation2 + $0x18] sm:$0xff] %vm99_vm1, %v206_v54 }
 0x11d   :  { %247 = vrot.lane.b32.xlu0 %v196_v44, %s3492_s7  ;;  %v2862_v57 = vpop.f32.mrb[4].mxu0  ;;  %231 = vst.msk [vmem:[#allocation2 + $0x10] sm:$0xff] %vm99_vm1, %v201_v56  ;;  %249 = vrot.lane.b32.xlu1 %v201_v56, %s3492_s7 }
 0x11e   :  { %v439_v49 = vpop.f32.mrb[2].mxu1  ;;  %v216_v58 = vadd.f32 %v2862_v57, %v2636_v42  ;;  %v210_v59 = vpop.f32.mrb[5].mxu0 }
 0x11f   :  { %v2887_v50 = vpop.f32.mrb[3].mxu1  ;;  %v211_v60 = vadd.f32 %v2636_v42, %v210_v59  ;;  %v599_v32 = vld [vmem:[#allocation2 + $0x8] sm:$0xff] }
 0x120   :  { %v297_v51 = vld [vmem:[#allocation2] sm:$0xff]  ;;  %234 = vst.msk [vmem:[#allocation2 + $0x28] sm:$0xff] %vm99_vm1, %v216_v58 }
 0x121   :  { %v372_v53 = vadd.f32 %v368_v46, %v297_v51  ;;  %233 = vst.msk [vmem:[#allocation2 + $0x20] sm:$0xff] %vm99_vm1, %v211_v60  ;;  %253 = vrot.lane.b32.xlu0 %v211_v60, %s3492_s7  ;;  %251 = vrot.lane.b32.xlu1 %v206_v54, %s3492_s7  ;;  %v2865_v61 = vpop.f32.mrb[6].mxu0 }
 0x122   :  { %v226_v62 = vadd.f32 %v2865_v61, %v2636_v42  ;;  %v220_v63 = vpop.f32.mrb[7].mxu0 }
 0x123   :  { %2919 = vmatmul.mubr.msk.f32.vlgmr.msra.gmra.mrb[10].mxu0 %vm99_vm1, %v372_v53  ;;  %v221_v2 = vadd.f32 %v2636_v42, %v220_v63 }
 0x124   :  { %3253 = vmatpush3.bf16.msra.mxu0 %v3663_v25  ;;  %2940 = vmatprep.mubr.msk.f32.mxu0 %vm3490_vm0, %v3491_v1  ;;  %v896_v50 = vld [vmem:[#allocation2 + $0x10] sm:$0xff] }
 0x125   :  { %3254 = vmatprep.subr.bf16.mxu0 %v3489_v0  ;;  %255 = vrot.lane.b32.xlu1 %v216_v58, %s3492_s7  ;;  %235 = vst.msk [vmem:[#allocation2 + $0x30] sm:$0xff] %vm99_vm1, %v221_v2  ;;  %v514_v3 = vpop.f32.mrb[8].mxu0 }
 0x126   :  { %257 = vrot.lane.b32.xlu0 %v221_v2, %s3492_s7  ;;  %v2898_v4 = vpop.f32.mrb[9].mxu0 }
 0x128   :  { %3256 = vmatpush3.bf16.msra.mxu0 %v3696_v33 }
 0x129   :  { %3263 = vmatprep.subr.bf16.mxu0 %v3489_v0  ;;  %259 = vrot.lane.b32.xlu1 %v226_v62, %s3492_s7 }
 0x18b   :  { %v246_v5 = vpop.permute.xlu0 %245 }
 0x18c   :  { %269 = vst.msk [vmem:[#allocation3] sm:$0xff] %vm99_vm1, %v246_v5 }
 0x18f   :  { %v248_v6 = vpop.permute.xlu0 %247  ;;  %v250_v13 = vpop.permute.xlu1 %249 }
 0x190   :  { %270 = vst.msk [vmem:[#allocation3 + $0x8] sm:$0xff] %vm99_vm1, %v248_v6  ;;  %271 = vst.msk [vmem:[#allocation3 + $0x10] sm:$0xff] %vm99_vm1, %v250_v13 }
 0x193   :  { %v298_v7 = vld [vmem:[#allocation3] sm:$0xff]  ;;  %v254_v15 = vpop.permute.xlu0 %253  ;;  %v252_v16 = vpop.permute.xlu1 %251 }
 0x194   :  { %v443_v8 = vadd.f32 %v439_v49, %v298_v7  ;;  %273 = vst.msk [vmem:[#allocation3 + $0x20] sm:$0xff] %vm99_vm1, %v254_v15  ;;  %272 = vst.msk [vmem:[#allocation3 + $0x18] sm:$0xff] %vm99_vm1, %v252_v16 }
 0x196   :  { %v444_v9 = vmax.f32 %v443_v8, 0.0 }
 0x197   :  { %v256_v18 = vpop.permute.xlu1 %255  ;;  %v601_v28 = vld [vmem:[#allocation3 + $0x8] sm:$0xff]  ;;  %v898_v46 = vld [vmem:[#allocation3 + $0x10] sm:$0xff] }
 0x198   :  { %2908 = vmatmul.mubr.msk.f32.vlgmr.msra.gmra.mrb[4].mxu1 %vm99_vm1, %v444_v9  ;;  %v258_v17 = vpop.permute.xlu0 %257  ;;  %274 = vst.msk [vmem:[#allocation3 + $0x28] sm:$0xff] %vm99_vm1, %v256_v18 }
 0x199   :  { %3247 = vmatpush3.bf16.msra.mxu1 %v3650_v21  ;;  %2929 = vmatprep.mubr.msk.f32.mxu1 %vm3490_vm0, %v3491_v1  ;;  %275 = vst.msk [vmem:[#allocation3 + $0x30] sm:$0xff] %vm99_vm1, %v258_v17 }
 0x19a   :  { %3248 = vmatprep.subr.bf16.mxu1 %v3489_v0 }
 0x19b   :  { %v260_v19 = vpop.permute.xlu1 %259  ;;  %v1195_v61 = vld [vmem:[#allocation3 + $0x18] sm:$0xff]  ;;  %v1492_v16 = vld [vmem:[#allocation3 + $0x20] sm:$0xff] }
 0x19c   :  { %276 = vst.msk [vmem:[#allocation3 + $0x38] sm:$0xff] %vm99_vm1, %v260_v19 }
 0x19d   :  { %3250 = vmatpush3.bf16.msra.mxu1 %v3672_v27 }
 0x19e   :  { %3257 = vmatprep.subr.bf16.mxu1 %v3489_v0 }
 0x1a0   :  { %2930 = vmatmul.mubr.msk.f32.vlgmr.msra.gmra.mrb[6].mxu1 %vm99_vm1, %v372_v53 }
 0x1a1   :  { %3259 = vmatpush3.bf16.msra.mxu1 %v3723_v38  ;;  %2951 = vmatprep.mubr.msk.f32.mxu1 %vm3490_vm0, %v3491_v1 }
 0x1a2   :  { %3260 = vmatprep.subr.bf16.mxu1 %v3489_v0 }
 0x1a5   :  { %3262 = vmatpush3.bf16.msra.mxu1 %v3733_v41 }
 0x1a6   :  { %3269 = vmatprep.subr.bf16.mxu1 %v3489_v0 }
 0x1f6   :  { %v671_v10 = vpop.f32.mrb[10].mxu0 }
 0x1f7   :  { %v2920_v11 = vpop.f32.mrb[11].mxu0  ;;  %v675_v34 = vadd.f32 %v671_v10, %v599_v32 }
 0x26b   :  { %v587_v22 = vpop.f32.mrb[4].mxu1 }
 0x26c   :  { %v588_v23 = vadd.f32 %v587_v22, %v514_v3  ;;  %v2909_v24 = vpop.f32.mrb[5].mxu1  ;;  %v1193_v3 = vld [vmem:[#allocation2 + $0x18] sm:$0xff]  ;;  %v1490_v22 = vld [vmem:[#allocation2 + $0x20] sm:$0xff] }
 0x26e   :  { %v597_v26 = vadd.f32 %v3784_v20, %v588_v23 }
 0x270   :  { %2941 = vmatmul.mubr.msk.f32.vlgmr.msra.gmra.mrb[12].mxu0 %vm99_vm1, %v597_v26 }
 0x271   :  { %3265 = vmatpush3.bf16.msra.mxu0 %v3628_v12  ;;  %2962 = vmatprep.mubr.msk.f32.mxu0 %vm3490_vm0, %v3491_v1 }
 0x272   :  { %3266 = vmatprep.subr.bf16.mxu0 %v3489_v0 }
 0x273   :  { %v742_v29 = vpop.f32.mrb[6].mxu1 }
 0x274   :  { %v746_v30 = vadd.f32 %v742_v29, %v601_v28  ;;  %v2931_v31 = vpop.f32.mrb[7].mxu1 }
 0x275   :  { %3268 = vmatpush3.bf16.msra.mxu0 %v3634_v14 }
 0x276   :  { %v747_v35 = vmax.f32 %v746_v30, 0.0  ;;  %3275 = vmatprep.subr.bf16.mxu0 %v3489_v0 }
 0x278   :  { %2952 = vmatmul.mubr.msk.f32.vlgmr.msra.gmra.mrb[8].mxu1 %vm99_vm1, %v747_v35  ;;  %2963 = vmatmul.mubr.msk.f32.vlgmr.msra.gmra.mrb[14].mxu0 %vm99_vm1, %v675_v34 }
 0x279   :  { %3271 = vmatpush3.bf16.msra.mxu1 %v3650_v21  ;;  %2973 = vmatprep.mubr.msk.f32.mxu1 %vm3490_vm0, %v3491_v1 }
 0x27a   :  { %3272 = vmatprep.subr.bf16.mxu1 %v3489_v0  ;;  %3277 = vmatpush3.bf16.msra.mxu0 %v3663_v25 }
 0x27b   :  { %3278 = vmatprep.subr.bf16.mxu0 %v3489_v0  ;;  %2984 = vmatprep.mubr.msk.f32.mxu0 %vm3490_vm0, %v3491_v1 }
 0x27d   :  { %3274 = vmatpush3.bf16.msra.mxu1 %v3672_v27 }
 0x27e   :  { %3280 = vmatpush3.bf16.msra.mxu0 %v3696_v33  ;;  %3281 = vmatprep.subr.bf16.mxu1 %v3489_v0 }
 0x27f   :  { %3287 = vmatprep.subr.bf16.mxu0 %v3489_v0 }
 0x280   :  { %2974 = vmatmul.mubr.msk.f32.vlgmr.msra.gmra.mrb[10].mxu1 %vm99_vm1, %v675_v34 }
 0x281   :  { %3283 = vmatpush3.bf16.msra.mxu1 %v3723_v38  ;;  %2995 = vmatprep.mubr.msk.f32.mxu1 %vm3490_vm0, %v3491_v1 }
 0x282   :  { %3284 = vmatprep.subr.bf16.mxu1 %v3489_v0 }
 0x285   :  { %3286 = vmatpush3.bf16.msra.mxu1 %v3733_v41 }
 0x286   :  { %3293 = vmatprep.subr.bf16.mxu1 %v3489_v0 }
 0x343   :  { %v817_v36 = vpop.f32.mrb[12].mxu0 }
 0x344   :  { %v2942_v37 = vpop.f32.mrb[13].mxu0 }
 0x34b   :  { %v890_v39 = vpop.f32.mrb[8].mxu1  ;;  %v968_v40 = vpop.f32.mrb[14].mxu0 }
 0x34c   :  { %v891_v42 = vadd.f32 %v890_v39, %v817_v36  ;;  %v2953_v43 = vpop.f32.mrb[9].mxu1  ;;  %v2964_v44 = vpop.f32.mrb[15].mxu0  ;;  %v972_v51 = vadd.f32 %v968_v40, %v896_v50  ;;  %v1789_v36 = vld [vmem:[#allocation3 + $0x28] sm:$0xff] }
 0x34e   :  { %v894_v45 = vadd.f32 %v3784_v20, %v891_v42  ;;  %v1787_v42 = vld [vmem:[#allocation2 + $0x28] sm:$0xff] }
 0x350   :  { %2985 = vmatmul.mubr.msk.f32.vlgmr.msra.gmra.mrb[16].mxu0 %vm99_vm1, %v894_v45 }
 0x351   :  { %3289 = vmatpush3.bf16.msra.mxu0 %v3628_v12  ;;  %3006 = vmatprep.mubr.msk.f32.mxu0 %vm3490_vm0, %v3491_v1 }
 0x352   :  { %3290 = vmatprep.subr.bf16.mxu0 %v3489_v0 }
 0x353   :  { %v1039_v47 = vpop.f32.mrb[10].mxu1 }
 0x354   :  { %v1043_v48 = vadd.f32 %v1039_v47, %v898_v46  ;;  %v2975_v49 = vpop.f32.mrb[11].mxu1 }
 0x355   :  { %3292 = vmatpush3.bf16.msra.mxu0 %v3634_v14 }
 0x356   :  { %v1044_v52 = vmax.f32 %v1043_v48, 0.0  ;;  %3299 = vmatprep.subr.bf16.mxu0 %v3489_v0 }
 0x358   :  { %2996 = vmatmul.mubr.msk.f32.vlgmr.msra.gmra.mrb[12].mxu1 %vm99_vm1, %v1044_v52  ;;  %3007 = vmatmul.mubr.msk.f32.vlgmr.msra.gmra.mrb[18].mxu0 %vm99_vm1, %v972_v51 }
 0x359   :  { %3295 = vmatpush3.bf16.msra.mxu1 %v3650_v21  ;;  %3017 = vmatprep.mubr.msk.f32.mxu1 %vm3490_vm0, %v3491_v1 }
 0x35a   :  { %3296 = vmatprep.subr.bf16.mxu1 %v3489_v0  ;;  %3301 = vmatpush3.bf16.msra.mxu0 %v3663_v25 }
 0x35b   :  { %3302 = vmatprep.subr.bf16.mxu0 %v3489_v0  ;;  %3028 = vmatprep.mubr.msk.f32.mxu0 %vm3490_vm0, %v3491_v1 }
 0x35d   :  { %3298 = vmatpush3.bf16.msra.mxu1 %v3672_v27 }
 0x35e   :  { %3304 = vmatpush3.bf16.msra.mxu0 %v3696_v33  ;;  %3305 = vmatprep.subr.bf16.mxu1 %v3489_v0 }
 0x35f   :  { %3311 = vmatprep.subr.bf16.mxu0 %v3489_v0 }
 0x360   :  { %3018 = vmatmul.mubr.msk.f32.vlgmr.msra.gmra.mrb[14].mxu1 %vm99_vm1, %v972_v51  ;;  %v2084_v51 = vld [vmem:[#allocation2 + $0x30] sm:$0xff] }
 0x361   :  { %3307 = vmatpush3.bf16.msra.mxu1 %v3723_v38  ;;  %3039 = vmatprep.mubr.msk.f32.mxu1 %vm3490_vm0, %v3491_v1 }
 0x362   :  { %3308 = vmatprep.subr.bf16.mxu1 %v3489_v0 }
 0x365   :  { %3310 = vmatpush3.bf16.msra.mxu1 %v3733_v41 }
 0x366   :  { %3317 = vmatprep.subr.bf16.mxu1 %v3489_v0 }
 0x423   :  { %v1114_v53 = vpop.f32.mrb[16].mxu0 }
 0x424   :  { %v2986_v54 = vpop.f32.mrb[17].mxu0 }
 0x425   :  { %v2462_v54 = vld [vmem:[#allocation8 + $0x8] sm:$0xff] }
 0x42b   :  { %v1187_v55 = vpop.f32.mrb[12].mxu1  ;;  %v1265_v56 = vpop.f32.mrb[18].mxu0 }
 0x42c   :  { %v1188_v57 = vadd.f32 %v1187_v55, %v1114_v53  ;;  %v2997_v58 = vpop.f32.mrb[13].mxu1  ;;  %v3008_v59 = vpop.f32.mrb[19].mxu0  ;;  %v1269_v4 = vadd.f32 %v1265_v56, %v1193_v3  ;;  %v2458_v56 = vld [vmem:[%s3977_s9 + $0x8] sm:$0xff] }
 0x42d   :  { %v2463_v58 = vld [vmem:[#allocation8 + $0x10] sm:$0xff] }
 0x42e   :  { %v1191_v60 = vadd.f32 %v3784_v20, %v1188_v57  ;;  %v2459_v59 = vld [vmem:[%s3977_s9 + $0x10] sm:$0xff] }
 0x430   :  { %3029 = vmatmul.mubr.msk.f32.vlgmr.msra.gmra.mrb[20].mxu0 %vm99_vm1, %v1191_v60 }
 0x431   :  { %3313 = vmatpush3.bf16.msra.mxu0 %v3628_v12  ;;  %3050 = vmatprep.mubr.msk.f32.mxu0 %vm3490_vm0, %v3491_v1 }
 0x432   :  { %3314 = vmatprep.subr.bf16.mxu0 %v3489_v0 }
 0x433   :  { %v1336_v62 = vpop.f32.mrb[14].mxu1 }
 0x434   :  { %v1340_v63 = vadd.f32 %v1336_v62, %v1195_v61  ;;  %v3019_v2 = vpop.f32.mrb[15].mxu1  ;;  %v2460_v61 = vld [vmem:[%s3977_s9 + $0x18] sm:$0xff] }
 0x435   :  { %3316 = vmatpush3.bf16.msra.mxu0 %v3634_v14  ;;  %v3399_v62 = vpack.c.bf16 %v2460_v61, %v2459_v59 }
 0x436   :  { %v1341_v5 = vmax.f32 %v1340_v63, 0.0  ;;  %3323 = vmatprep.subr.bf16.mxu0 %v3489_v0 }
 0x438   :  { %3040 = vmatmul.mubr.msk.f32.vlgmr.msra.gmra.mrb[16].mxu1 %vm99_vm1, %v1341_v5  ;;  %3051 = vmatmul.mubr.msk.f32.vlgmr.msra.gmra.mrb[22].mxu0 %vm99_vm1, %v1269_v4 }
 0x439   :  { %3319 = vmatpush3.bf16.msra.mxu1 %v3650_v21  ;;  %3061 = vmatprep.mubr.msk.f32.mxu1 %vm3490_vm0, %v3491_v1 }
 0x43a   :  { %3320 = vmatprep.subr.bf16.mxu1 %v3489_v0  ;;  %3325 = vmatpush3.bf16.msra.mxu0 %v3663_v25 }
 0x43b   :  { %3326 = vmatprep.subr.bf16.mxu0 %v3489_v0  ;;  %3072 = vmatprep.mubr.msk.f32.mxu0 %vm3490_vm0, %v3491_v1 }
 0x43d   :  { %3322 = vmatpush3.bf16.msra.mxu1 %v3672_v27 }
 0x43e   :  { %3328 = vmatpush3.bf16.msra.mxu0 %v3696_v33  ;;  %3329 = vmatprep.subr.bf16.mxu1 %v3489_v0 }
 0x43f   :  { %3335 = vmatprep.subr.bf16.mxu0 %v3489_v0 }
 0x440   :  { %3062 = vmatmul.mubr.msk.f32.vlgmr.msra.gmra.mrb[18].mxu1 %vm99_vm1, %v1269_v4  ;;  %v2381_v4 = vld [vmem:[#allocation3 + $0x38] sm:$0xff] }
 0x441   :  { %3331 = vmatpush3.bf16.msra.mxu1 %v3723_v38  ;;  %3083 = vmatprep.mubr.msk.f32.mxu1 %vm3490_vm0, %v3491_v1 }
 0x442   :  { %3332 = vmatprep.subr.bf16.mxu1 %v3489_v0 }
 0x445   :  { %3334 = vmatpush3.bf16.msra.mxu1 %v3733_v41 }
 0x446   :  { %3341 = vmatprep.subr.bf16.mxu1 %v3489_v0 }
 0x503   :  { %v1411_v6 = vpop.f32.mrb[20].mxu0 }
 0x504   :  { %v3030_v7 = vpop.f32.mrb[21].mxu0 }
 0x50b   :  { %v1484_v8 = vpop.f32.mrb[16].mxu1  ;;  %v1562_v9 = vpop.f32.mrb[22].mxu0 }
 0x50c   :  { %v1485_v10 = vadd.f32 %v1484_v8, %v1411_v6  ;;  %v3041_v11 = vpop.f32.mrb[17].mxu1  ;;  %v3052_v13 = vpop.f32.mrb[23].mxu0  ;;  %v1566_v23 = vadd.f32 %v1562_v9, %v1490_v22 }
 0x50e   :  { %v1488_v15 = vadd.f32 %v3784_v20, %v1485_v10 }
 0x510   :  { %3073 = vmatmul.mubr.msk.f32.vlgmr.msra.gmra.mrb[24].mxu0 %vm99_vm1, %v1488_v15  ;;  %v2678_v15 = vld [vmem:[%s3979_s11] ss:$0 sm:$0xff] }
 0x511   :  { %3337 = vmatpush3.bf16.msra.mxu0 %v3628_v12  ;;  %3094 = vmatprep.mubr.msk.f32.mxu0 %vm3490_vm0, %v3491_v1 }
 0x512   :  { %3338 = vmatprep.subr.bf16.mxu0 %v3489_v0 }
 0x513   :  { %v1633_v17 = vpop.f32.mrb[18].mxu1 }
 0x514   :  { %v1637_v18 = vadd.f32 %v1633_v17, %v1492_v16  ;;  %v3063_v19 = vpop.f32.mrb[19].mxu1 }
 0x515   :  { %3340 = vmatpush3.bf16.msra.mxu0 %v3634_v14 }
 0x516   :  { %v1638_v24 = vmax.f32 %v1637_v18, 0.0  ;;  %3347 = vmatprep.subr.bf16.mxu0 %v3489_v0 }
 0x518   :  { %3084 = vmatmul.mubr.msk.f32.vlgmr.msra.gmra.mrb[20].mxu1 %vm99_vm1, %v1638_v24  ;;  %3095 = vmatmul.mubr.msk.f32.vlgmr.msra.gmra.mrb[26].mxu0 %vm99_vm1, %v1566_v23 }
 0x519   :  { %3343 = vmatpush3.bf16.msra.mxu1 %v3650_v21  ;;  %3105 = vmatprep.mubr.msk.f32.mxu1 %vm3490_vm0, %v3491_v1 }
 0x51a   :  { %3344 = vmatprep.subr.bf16.mxu1 %v3489_v0  ;;  %3349 = vmatpush3.bf16.msra.mxu0 %v3663_v25 }
 0x51b   :  { %3350 = vmatprep.subr.bf16.mxu0 %v3489_v0  ;;  %3116 = vmatprep.mubr.msk.f32.mxu0 %vm3490_vm0, %v3491_v1 }
 0x51d   :  { %3346 = vmatpush3.bf16.msra.mxu1 %v3672_v27 }
 0x51e   :  { %3352 = vmatpush3.bf16.msra.mxu0 %v3696_v33  ;;  %3353 = vmatprep.subr.bf16.mxu1 %v3489_v0 }
 0x51f   :  { %3359 = vmatprep.subr.bf16.mxu0 %v3489_v0 }
 0x520   :  { %3106 = vmatmul.mubr.msk.f32.vlgmr.msra.gmra.mrb[22].mxu1 %vm99_vm1, %v1566_v23 }
 0x521   :  { %3355 = vmatpush3.bf16.msra.mxu1 %v3723_v38  ;;  %3127 = vmatprep.mubr.msk.f32.mxu1 %vm3490_vm0, %v3491_v1 }
 0x522   :  { %3356 = vmatprep.subr.bf16.mxu1 %v3489_v0 }
 0x525   :  { %3358 = vmatpush3.bf16.msra.mxu1 %v3733_v41 }
 0x526   :  { %3365 = vmatprep.subr.bf16.mxu1 %v3489_v0 }
 0x5e3   :  { %v1708_v26 = vpop.f32.mrb[24].mxu0 }
 0x5e4   :  { %v3074_v28 = vpop.f32.mrb[25].mxu0 }
 0x5eb   :  { %v1781_v29 = vpop.f32.mrb[20].mxu1  ;;  %v1859_v30 = vpop.f32.mrb[26].mxu0 }
 0x5ec   :  { %v1782_v31 = vadd.f32 %v1781_v29, %v1708_v26  ;;  %v3085_v32 = vpop.f32.mrb[21].mxu1  ;;  %v3096_v34 = vpop.f32.mrb[27].mxu0  ;;  %v1863_v43 = vadd.f32 %v1859_v30, %v1787_v42 }
 0x5ee   :  { %v1785_v35 = vadd.f32 %v3784_v20, %v1782_v31 }
 0x5f0   :  { %3117 = vmatmul.mubr.msk.f32.vlgmr.msra.gmra.mrb[28].mxu0 %vm99_vm1, %v1785_v35 }
 0x5f1   :  { %3361 = vmatpush3.bf16.msra.mxu0 %v3628_v12  ;;  %3138 = vmatprep.mubr.msk.f32.mxu0 %vm3490_vm0, %v3491_v1 }
 0x5f2   :  { %3362 = vmatprep.subr.bf16.mxu0 %v3489_v0 }
 0x5f3   :  { %v1930_v37 = vpop.f32.mrb[22].mxu1 }
 0x5f4   :  { %v1934_v39 = vadd.f32 %v1930_v37, %v1789_v36  ;;  %v3107_v40 = vpop.f32.mrb[23].mxu1 }
 0x5f5   :  { %3364 = vmatpush3.bf16.msra.mxu0 %v3634_v14 }
 0x5f6   :  { %v1935_v44 = vmax.f32 %v1934_v39, 0.0  ;;  %3371 = vmatprep.subr.bf16.mxu0 %v3489_v0 }
 0x5f8   :  { %3128 = vmatmul.mubr.msk.f32.vlgmr.msra.gmra.mrb[24].mxu1 %vm99_vm1, %v1935_v44  ;;  %3139 = vmatmul.mubr.msk.f32.vlgmr.msra.gmra.mrb[30].mxu0 %vm99_vm1, %v1863_v43 }
 0x5f9   :  { %3367 = vmatpush3.bf16.msra.mxu1 %v3650_v21  ;;  %3149 = vmatprep.mubr.msk.f32.mxu1 %vm3490_vm0, %v3491_v1 }
 0x5fa   :  { %3368 = vmatprep.subr.bf16.mxu1 %v3489_v0  ;;  %3373 = vmatpush3.bf16.msra.mxu0 %v3663_v25 }
 0x5fb   :  { %3374 = vmatprep.subr.bf16.mxu0 %v3489_v0  ;;  %3160 = vmatprep.mubr.msk.f32.mxu0 %vm3490_vm0, %v3491_v1 }
 0x5fd   :  { %3370 = vmatpush3.bf16.msra.mxu1 %v3672_v27 }
 0x5fe   :  { %3376 = vmatpush3.bf16.msra.mxu0 %v3696_v33  ;;  %3377 = vmatprep.subr.bf16.mxu1 %v3489_v0 }
 0x5ff   :  { %3383 = vmatprep.subr.bf16.mxu0 %v3489_v0 }
 0x600   :  { %3150 = vmatmul.mubr.msk.f32.vlgmr.msra.gmra.mrb[26].mxu1 %vm99_vm1, %v1863_v43 }
 0x601   :  { %3379 = vmatpush3.bf16.msra.mxu1 %v3723_v38  ;;  %3171 = vmatprep.mubr.msk.f32.mxu1 %vm3490_vm0, %v3491_v1  ;;  %v2086_v38 = vld [vmem:[#allocation3 + $0x30] sm:$0xff] }
 0x602   :  { %3380 = vmatprep.subr.bf16.mxu1 %v3489_v0 }
 0x605   :  { %3382 = vmatpush3.bf16.msra.mxu1 %v3733_v41 }
 0x606   :  { %3389 = vmatprep.subr.bf16.mxu1 %v3489_v0 }
 0x6c3   :  { %v2005_v12 = vpop.f32.mrb[28].mxu0 }
 0x6c4   :  { %v3118_v14 = vpop.f32.mrb[29].mxu0 }
 0x6cb   :  { %v2078_v25 = vpop.f32.mrb[24].mxu1  ;;  %v2156_v33 = vpop.f32.mrb[30].mxu0 }
 0x6cc   :  { %v2079_v45 = vadd.f32 %v2078_v25, %v2005_v12  ;;  %v3129_v46 = vpop.f32.mrb[25].mxu1  ;;  %v3140_v47 = vpop.f32.mrb[31].mxu0  ;;  %v2160_v52 = vadd.f32 %v2156_v33, %v2084_v51 }
 0x6ce   :  { %v2082_v48 = vadd.f32 %v3784_v20, %v2079_v45 }
 0x6d0   :  { %3161 = vmatmul.mubr.msk.f32.vlgmr.msra.gmra.mrb[32].mxu0 %vm99_vm1, %v2082_v48 }
 0x6d1   :  { %3385 = vmatpush3.bf16.msra.mxu0 %v3650_v21  ;;  %3182 = vmatprep.mubr.msk.f32.mxu0 %vm3490_vm0, %v3491_v1  ;;  %v2461_v21 = vld [vmem:[#allocation8] sm:$0xff] }
 0x6d2   :  { %3386 = vmatprep.subr.bf16.mxu0 %v3489_v0  ;;  %v3390_v55 = vpack.c.bf16 %v2462_v54, %v2461_v21 }
 0x6d3   :  { %v2227_v41 = vpop.f32.mrb[26].mxu1 }
 0x6d4   :  { %v2231_v49 = vadd.f32 %v2227_v41, %v2086_v38  ;;  %v3151_v50 = vpop.f32.mrb[27].mxu1 }
 0x6d5   :  { %3388 = vmatpush3.bf16.msra.mxu0 %v3672_v27  ;;  %v2457_v27 = vld [vmem:[%s3977_s9] sm:$0xff] }
 0x6d6   :  { %v2232_v53 = vmax.f32 %v2231_v49, 0.0  ;;  %3395 = vmatprep.subr.bf16.mxu0 %v3489_v0  ;;  %v3396_v57 = vpack.c.bf16 %v2458_v56, %v2457_v27 }
 0x6d8   :  { %3172 = vmatmul.mubr.msk.f32.vlgmr.msra.gmra.mrb[28].mxu1 %vm99_vm1, %v2232_v53  ;;  %3183 = vmatmul.mubr.msk.f32.vlgmr.msra.gmra.mrb[34].mxu0 %vm99_vm1, %v2160_v52 }
 0x6d9   :  { %3193 = vmatprep.mubr.msk.f32.mxu1 %vm3490_vm0, %v3491_v1  ;;  %3204 = vmatprep.mubr.msk.f32.mxu0 %vm3490_vm0, %v3491_v1  ;;  %v2464_v1 = vld [vmem:[#allocation8 + $0x18] sm:$0xff] }
 0x6da   :  { %3391 = vmatpush3.bf16.msra.mxu1 %v3390_v55  ;;  %3397 = vmatpush3.bf16.msra.mxu0 %v3396_v57  ;;  %v3393_v60 = vpack.c.bf16 %v2464_v1, %v2463_v58 }
 0x6db   :  { %3392 = vmatprep.subr.bf16.mxu1 %v3489_v0  ;;  %3398 = vmatprep.subr.bf16.mxu0 %v3489_v0 }
 0x6de   :  { %3394 = vmatpush3.bf16.msra.mxu1 %v3393_v60  ;;  %3400 = vmatpush3.bf16.msra.mxu0 %v3399_v62 }
 0x7a3   :  { %v2302_v63 = vpop.f32.mrb[32].mxu0 }
 0x7a4   :  { %v3162_v2 = vpop.f32.mrb[33].mxu0 }
 0x7ab   :  { %v2375_v3 = vpop.f32.mrb[28].mxu1  ;;  %v2451_v5 = vpop.f32.mrb[34].mxu0 }
 0x7ac   :  { %v2376_v0 = vadd.f32 %v2375_v3, %v2302_v63  ;;  %v2455_v6 = vadd.f32 %v2451_v5, %v2381_v4  ;;  %v3173_v7 = vpop.f32.mrb[29].mxu1  ;;  %v3184_v8 = vpop.f32.mrb[35].mxu0 }
 0x7ae   :  { %v2379_v9 = vadd.f32 %v3784_v20, %v2376_v0  ;;  %v2456_v10 = vmax.f32 %v2455_v6, 0.0 }
 0x7b0   :  { %3194 = vmatmul.mubr.msk.f32.vlgmr.msra.gmra.mrb[30].mxu1 %vm99_vm1, %v2379_v9  ;;  %3205 = vmatmul.mubr.msk.f32.vlgmr.msra.gmra.mrb[36].mxu0 %vm99_vm1, %v2456_v10 }
 0x883   :  { %v2534_v11 = vpop.f32.mrb[30].mxu1  ;;  %v2607_v13 = vpop.f32.mrb[36].mxu0 }
 0x884   :  { %v2608_v16 = vadd.f32 %v2607_v13, %v2534_v11  ;;  %v3195_v17 = vpop.f32.mrb[31].mxu1  ;;  %v3206_v18 = vpop.f32.mrb[37].mxu0 }
 0x886   :  { %v2618_v19 = vadd.f32 %v2678_v15, %v2608_v16 }
 0x888   :  { %2619 = vmax.xlane.f32.xlu0 %v2618_v19 }
 0x915   :  { %v2620_v22 = vpop.xlane.xlu0 %2619 }
 0x916   :  { %v2621_v23 = vsub.f32 %v2618_v19, %v2620_v22 }
 0x918   :  { %v2622_v24 = vmul.f32 1.442695, %v2621_v23 }
 0x91a   :  { %3410 = vpow2.f32 %v2622_v24 }
 0x924   :  { %v3411_v20 = vpop.eup %3410 }
 0x925   :  { %2624 = vadd.xlane.f32.xlu1 %v3411_v20 }
 0x9b2   :  { %v2625_v26 = vpop.xlane.xlu1 %2624 }
 0x9b3   :  { %3412 = vlog2.f32 %v2625_v26 }
 0x9bd   :  { %v3413_v28 = vpop.eup %3412 }
 0x9be   :  { %v2627_v29 = vmul.f32 0.6931472, %v3413_v28 }
 0x9c0   :  { %v2628_v30 = vsub.f32 %v2621_v23, %v2627_v29 }
 0x9c2   :  { %2629 = vst [vmem:[%s3980_s12] sm:$0xff] %v2628_v30 }
 0x9c3   :  { %2634 = vsyncpa [#allocation5], 1 }
 0x9c4   :  { %2635 = vsyncpa [#allocation7], 1 }

</bundles_post_ra>
